<compile_context>
chip_gen: v5e
topology: v5e:2x2
jax: 0.10.0
libtpu: 0.0.40
codegen_flags: <defaults>
</compile_context>

<pallas_src>
import numpy as np
import jax
import jax.numpy as jnp
from jax.experimental import pallas as pl
from jax.experimental.pallas import tpu as pltpu

VMEM_LIMIT = 32 * 1024 * 1024  # safe on v5e / v6e / v7x


# --------------------------------------------------------------------------
# trace-time helper: PyTorch AdaptiveAvgPool1d bin weights as a dense matrix
# --------------------------------------------------------------------------
def _adaptive_pool_matrix(in_size: int, out_size: int) -> np.ndarray:
    """Row-stochastic (out_size, in_size) matrix. Bin i averages
    input[floor(i*in/out) : ceil((i+1)*in/out)] — exact PyTorch semantics."""
    m = np.zeros((out_size, in_size), dtype=np.float32)
    for i in range(out_size):
        s = (i * in_size) // out_size
        e = -((-(i + 1) * in_size) // out_size)  # ceil((i+1)*in/out)
        m[i, s:e] = 1.0 / (e - s)
    return m


# --------------------------------------------------------------------------
# Pallas kernel: pooled tokens for one batch element, already rearranged
# --------------------------------------------------------------------------
def _pool_embed_kernel(x_ref, m_ref, o_ref):
    # x_ref: (1, C, S)   one batch element, channel-first, flattened spatial
    # m_ref: (P2, S)     adaptive-pool weights (row q = output token q)
    # o_ref: (1, P2, C)  pooled tokens, channels on the 128-lane axis
    x = x_ref[0]                       # (C, S)
    m = m_ref[...]                     # (P2, S)
    out = jax.lax.dot_general(         # contract the spatial axis of both:
        m, x, (((1,), (1,)), ((), ())),        # (P2, S) x (C, S) -> (P2, C)
        preferred_element_type=jnp.float32,
        precision=jax.lax.Precision.HIGHEST)
    o_ref[0] = out.astype(o_ref.dtype)


# --------------------------------------------------------------------------
# wrapper
# --------------------------------------------------------------------------
def pool_embedding(x, patch: int):
    """PoolEmbedding forward: (B, C, H, W) -> (B, patch*patch, C)."""
    B, C, H, W = x.shape
    S = H * W
    P2 = patch * patch

    # TODO(synk): inputs here are tiny (feature maps feeding DCA); tile the
    # spatial axis if C * H * W ever exceeds a few MiB of VMEM per block.
    assert C * S * 4 <= 8 * 1024 * 1024, "add spatial tiling for huge inputs"

    mh = _adaptive_pool_matrix(H, patch)                     # (p, H)
    mw = _adaptive_pool_matrix(W, patch)                     # (p, W)
    # token q = i*patch + j averages row-bin i x col-bin j; flatten to (P2, S)
    m = jnp.asarray(np.einsum('ih,jw->ijhw', mh, mw).reshape(P2, S))

    x_flat = x.reshape(B, C, S)                              # free reshape, no transpose

    return pl.pallas_call(
        _pool_embed_kernel,
        out_shape=jax.ShapeDtypeStruct((B, P2, C), x.dtype),
        grid=(B,),
        in_specs=[
            pl.BlockSpec((1, C, S), lambda b: (b, 0, 0)),    # per-batch slab
            pl.BlockSpec((P2, S), lambda b: (0, 0)),         # shared weights
        ],
        out_specs=pl.BlockSpec((1, P2, C), lambda b: (b, 0, 0)),
        compiler_params=pltpu.CompilerParams(
            dimension_semantics=("parallel",),
            vmem_limit_bytes=VMEM_LIMIT),
    )(x_flat, m)


# --------------------------------------------------------------------------
# pure-JAX reference (PyTorch AdaptiveAvgPool2d + einops rearrange semantics)
# --------------------------------------------------------------------------
def pool_embedding_ref(x, patch: int):
    B, C, H, W = x.shape
    toks = []
    for i in range(patch):
        hs = (i * H) // patch
        he = -((-(i + 1) * H) // patch)
        for j in range(patch):
            ws = (j * W) // patch
            we = -((-(j + 1) * W) // patch)
            toks.append(jnp.mean(x[:, :, hs:he, ws:we], axis=(2, 3)))  # (B, C)
    return jnp.stack(toks, axis=1)                           # (B, P2, C)


# --------------------------------------------------------------------------
if __name__ == "__main__":
    key = jax.random.PRNGKey(0)
    k1, k2 = jax.random.split(key)
    patch = 4

    # divisible case (matches dcaunet usage) and a non-divisible adaptive case
    x1 = jax.random.normal(k1, (2, 4, 16, 16), dtype=jnp.float32)
    x2 = jax.random.normal(k2, (2, 32, 18, 14), dtype=jnp.float32)

    fwd = jax.jit(pool_embedding, static_argnames=("patch",))

    for x in (x1, x2):
        out = jax.block_until_ready(fwd(x, patch=patch))
        ref = jax.block_until_ready(pool_embedding_ref(x, patch))
        assert out.shape == (x.shape[0], patch * patch, x.shape[1])
        assert out.dtype == x.dtype
        assert jnp.allclose(out, ref, rtol=1e-3, atol=1e-3), "mismatch vs reference"

    print("KERNEL_OK")
</pallas_src>

<mosaic_0001>
module attributes {stable_mosaic.version = 11 : i64} {
  func.func @_pool_embed_kernel(%arg0: i32, %arg1: memref<1x4x256xf32, #tpu.memory_space<vmem>>, %arg2: memref<16x256xf32, #tpu.memory_space<vmem>>, %arg3: memref<1x16x4xf32, #tpu.memory_space<vmem>>) attributes {dimension_semantics = [#tpu.dimension_semantics<parallel>], iteration_bounds = array<i64: 2>, scalar_prefetch = 0 : i64, scratch_operands = 0 : i64, tpu.core_type = #tpu.core_type<tc>, window_params = [{transform_indices = @transform_0, window_bounds = array<i64: 1, 4, 256>}, {pipeline_mode = #tpu.pipeline_mode<synchronous>, transform_indices = @transform_1, window_bounds = array<i64: 16, 256>}, {transform_indices = @transform_2, window_bounds = array<i64: 1, 16, 4>}]} {
    %c0 = arith.constant 0 : index
    %c0_0 = arith.constant 0 : index
    %c0_1 = arith.constant 0 : index
    %0 = vector.load %arg1[%c0, %c0_0, %c0_1] : memref<1x4x256xf32, #tpu.memory_space<vmem>>, vector<1x4x256xf32>
    %1 = vector.shape_cast %0 : vector<1x4x256xf32> to vector<4x256xf32>
    %c0_2 = arith.constant 0 : index
    %c0_3 = arith.constant 0 : index
    %2 = vector.load %arg2[%c0_2, %c0_3] : memref<16x256xf32, #tpu.memory_space<vmem>>, vector<16x256xf32>
    %cst = arith.constant dense<0.000000e+00> : vector<16x4xf32>
    %3 = tpu.matmul %2, %1, %cst {dimension_numbers = #tpu.dot_dimension_numbers<[1], [1], [0], [0], [0, 0, 1, 0], [], []>, precision = #tpu.contract_precision<fp32>} : vector<16x256xf32>, vector<4x256xf32>, vector<16x4xf32> -> vector<16x4xf32>
    %c0_4 = arith.constant 0 : index
    %c0_5 = arith.constant 0 : index
    %c0_6 = arith.constant 0 : index
    %4 = vector.load %arg3[%c0_4, %c0_5, %c0_6] : memref<1x16x4xf32, #tpu.memory_space<vmem>>, vector<1x16x4xf32>
    %5 = vector.shape_cast %4 : vector<1x16x4xf32> to vector<16x4xf32>
    %6 = vector.shape_cast %3 : vector<16x4xf32> to vector<1x16x4xf32>
    tpu.vector_store %arg3[%c0_4, %c0_5, %c0_6], %6 {strides = array<i32>} : memref<1x16x4xf32, #tpu.memory_space<vmem>>, vector<1x16x4xf32>,
    return
  }
  func.func @transform_0(%arg0: i32) -> (i32, i32, i32) {
    %c0_i32 = arith.constant 0 : i32
    %c0_i32_0 = arith.constant 0 : i32
    %c0_i32_1 = arith.constant 0 : i32
    return %arg0, %c0_i32, %c0_i32_0 : i32, i32, i32
  }
  func.func @transform_1(%arg0: i32) -> (i32, i32) {
    %c0_i32 = arith.constant 0 : i32
    %c0_i32_0 = arith.constant 0 : i32
    %c0_i32_1 = arith.constant 0 : i32
    return %c0_i32, %c0_i32_0 : i32, i32
  }
  func.func @transform_2(%arg0: i32) -> (i32, i32, i32) {
    %c0_i32 = arith.constant 0 : i32
    %c0_i32_0 = arith.constant 0 : i32
    %c0_i32_1 = arith.constant 0 : i32
    return %arg0, %c0_i32, %c0_i32_0 : i32, i32, i32
  }
}

</mosaic_0001>

<bundles_post_ra>
// kernel: pool_embedding.1
= control target key start
LH: loop header
LB: loop body
LE: loop exit
PB: predicated region body
PF: predicated region fallthrough
CT: control target
= control target key end

     0   :  { %s611_s9 = smov 0   ;;  %s650_s0 = inlined_call_operand.vmem [shape: f32[2,4,256], index: 0, kind: input, shape index: {}]   ;;  %s651_s1 = inlined_call_operand.vmem [shape: f32[16,256], index: 1, kind: input, shape index: {}]   ;;  %s652_s2 = inlined_call_operand.vmem [shape: f32[2,16,4], index: 2, kind: output, shape index: {}]  }
   0x1 LB: > { %s567_s10 = sadd.s32 4294967295, %s594_s9   ;;  %p571_p0 = scmp.ge.s32.totalorder %s594_s9, 1  ;;  %s594_s9 = sphi %s611_s9, %s12_s9  }
   0x2   : > { %p112_p1 = scmp.lt.s32.totalorder %s594_s9, 3 }
   0x4   : > { %p113_p2 = pnand %p571_p0, %p112_p1 }
   0x5   : > { %p134_p3 = scmp.lt.s32.totalorder (!%p113_p2), %s567_s10, 1 }
   0x6   : > { %116 = sbr.rel (%p113_p2) target bundleno = 209 (0xd1), region = 28 }
   0xb   : > { %v145_v0 = vld [vmem:[%s651_s1] sm:$0xff]  ;;  %s654_s10 = smov (!%p134_p3, %s567_s10), 1  ;;  %v147_v3 = vld [vmem:[%s651_s1 + $0x10] sm:$0xff]  ;;  %v146_v13 = vld [vmem:[%s651_s1 + $0x8] sm:$0xff]  ;;  %vm509_vm0 = vcmask 31744  }
   0xc   : > { %v622_v1 = vand.u32 4294901760, %v145_v0  ;;  %s578_s13 = sshll.u32 %s654_s10, 3  ;;  %v180_v6 = vand.u32 4294901760, %v147_v3  ;;  %v349_v18 = vand.u32 4294901760, %v146_v13  ;;  %v148_v27 = vld [vmem:[%s651_s1 + $0x18] sm:$0xff]  ;;  %s579_s23 = sshll.u32 %s654_s10, 4 }
   0xd   : > { %s138_s16 = scalar_lea.vmem %s650_s0, %s578_s13  ;;  %v357_v30 = vand.u32 4294901760, %v148_v27  ;;  %s143_s26 = scalar_lea.vmem %s652_s2, %s579_s23 }
   0xe   : > { %v173_v2 = vsub.f32 %v145_v0, %v622_v1  ;;  %v144_v4 = vld [vmem:[%s138_s16] sm:$0xff]  ;;  %v181_v8 = vsub.f32 %v147_v3, %v180_v6  ;;  %v350_v24 = vsub.f32 %v146_v13, %v349_v18 }
   0xf   : > { %150 = vst [vmem:[#allocation1] ss:$2 sm:$0xff] %v144_v4  ;;  %v358_v32 = vsub.f32 %v148_v27, %v357_v30 }
  0x10   : > { %v174_v5 = vand.u32 4294901760, %v173_v2  ;;  %v182_v15 = vand.u32 4294901760, %v181_v8  ;;  %v351_v29 = vand.u32 4294901760, %v350_v24 }
  0x11   : > { %v359_v34 = vand.u32 4294901760, %v358_v32 }
  0x12   : > { %v175_v7 = vsub.f32 %v173_v2, %v174_v5  ;;  %v183_v21 = vsub.f32 %v181_v8, %v182_v15  ;;  %v352_v31 = vsub.f32 %v350_v24, %v351_v29 }
  0x13   : > { %v360_v35 = vsub.f32 %v358_v32, %v359_v34 }
  0x14   : > { %v176_v14 = vand.u32 4294901760, %v175_v7  ;;  %v184_v28 = vand.u32 4294901760, %v183_v21  ;;  %v353_v33 = vand.u32 4294901760, %v352_v31 }
  0x15   : > { %v361_v36 = vand.u32 4294901760, %v360_v35 }
  0x16   : > { %v151_v9 = vld.sshfl [vmem:[#allocation1] sm:$0xff pattern:$0x75316420]  ;;  %v152_v10 = vld.sshfl [vmem:[#allocation1 + $0x8] sm:$0xff pattern:$0x75316420] }
  0x17   : > { %v170_v11 = vand.u32 4294901760, %v151_v9  ;;  %v347_v12 = vand.u32 4294901760, %v152_v10 }
  0x19   : > { %171 = vmatpush.xpose.msra.mxu0 %v170_v11  ;;  %v205_v16 = vsub.f32 %v151_v9, %v170_v11  ;;  %264 = vmatpush.xpose.msra.mxu3 %v170_v11  ;;  %v382_v17 = vsub.f32 %v152_v10, %v347_v12 }
  0x1b   : > { %236 = vmatpush.xpose.msra.mxu2 %v205_v16  ;;  %v206_v19 = vand.u32 4294901760, %v205_v16  ;;  %v383_v20 = vand.u32 4294901760, %v382_v17 }
  0x1c   : > { %177 = vmatmul.f32.vlgmr.msra.gmra.mxu0 %v176_v14  ;;  %268 = vmatmul.f32.vlgmr.msra.gmra.mxu3 %v174_v5 }
  0x1d   : > { %v207_v22 = vsub.f32 %v205_v16, %v206_v19  ;;  %296 = vmatpush.xpose.msrb.mxu0 %v206_v19  ;;  %v384_v23 = vsub.f32 %v382_v17, %v383_v20 }
  0x1e   : > { %239 = vmatmul.f32.vlgmr.msra.gmra.mxu2 %v173_v2 }
  0x1f   : > { %348 = vmatpush.xpose.msrb.mxu2 %v347_v12  ;;  %v208_v25 = vand.u32 4294901760, %v207_v22  ;;  %v385_v26 = vand.u32 4294901760, %v384_v23 }
  0x21   : > { %413 = vmatpush.xpose.msra.mxu0 %v382_v17  ;;  %209 = vmatpush.xpose.msra.mxu1 %v208_v25 }
  0x22   : > { %386 = vmatpush.xpose.msrb.mxu3 %v385_v26 }
  0x23   : > { %473 = vmatpush.xpose.msra.mxu2 %v383_v20 }
  0x24   : > { %185 = vmatmul.f32.gmra.mxu0 %v184_v28  ;;  %211 = vmatmul.f32.vlgmr.msra.gmra.mxu1 %v622_v1 }
  0x25   : > { %322 = vmatpush.xpose.msrb.mxu1 %v170_v11  ;;  %274 = vmatmul.f32.gmra.mxu3 %v182_v15 }
  0x26   : > { %499 = vmatpush.xpose.msra.mxu3 %v347_v12  ;;  %244 = vmatmul.f32.gmra.mxu2 %v181_v8 }
  0x29   : > { %441 = vmatpush.xpose.msra.mxu1 %v347_v12 }
  0x2c   : > { %215 = vmatmul.f32.gmra.mxu1 %v180_v6  ;;  %298 = vmatmul.f32.vlgmr.msrb.gmra.mxu0 %v622_v1 }
  0x2d   : > { %388 = vmatmul.f32.vlgmr.msrb.gmra.mxu3 %v349_v18 }
  0x2e   : > { %354 = vmatmul.f32.vlgmr.msrb.gmra.mxu2 %v353_v33 }
  0x34   : > { %302 = vmatmul.f32.gmra.mxu0 %v180_v6  ;;  %324 = vmatmul.f32.vlgmr.msrb.gmra.mxu1 %v622_v1 }
  0x35   : > { %392 = vmatmul.f32.gmra.mxu3 %v357_v30 }
  0x36   : > { %362 = vmatmul.f32.gmra.mxu2 %v361_v36 }
  0x3c   : > { %328 = vmatmul.f32.gmra.mxu1 %v180_v6  ;;  %416 = vmatmul.f32.vlgmr.msra.gmra.mxu0 %v350_v24 }
  0x3d   : > { %501 = vmatmul.f32.vlgmr.msra.gmra.mxu3 %v349_v18 }
  0x3e   : > { %475 = vmatmul.f32.vlgmr.msra.gmra.mxu2 %v349_v18 }
  0x44   : > { %421 = vmatmul.f32.gmra.mxu0 %v358_v32  ;;  %445 = vmatmul.f32.vlgmr.msra.gmra.mxu1 %v351_v29 }
  0x45   : > { %505 = vmatmul.f32.gmra.mxu3 %v357_v30 }
  0x46   : > { %479 = vmatmul.f32.gmra.mxu2 %v357_v30 }
  0x4c   : > { %451 = vmatmul.f32.gmra.mxu1 %v359_v34 }
  0x99   : > { %v178_v37 = vpop.f32.mrf.mxu0 }
  0x9f   : > { %v269_v38 = vpop.f32.mrf.mxu3 }
  0xa1   : > { %v186_v39 = vpop.f32.mrf.mxu0  ;;  %v212_v40 = vpop.f32.mrf.mxu1 }
  0xa2   : > { %v240_v41 = vpop.f32.mrf.mxu2  ;;  %v213_v45 = vadd.f32 %v212_v40, %v178_v37 }
  0xa4   : > { %v241_v47 = vadd.f32 %v240_v41, %v213_v45 }
  0xa6   : > { %v270_v51 = vadd.f32 %v269_v38, %v241_v47 }
  0xa8   : > { %v275_v42 = vpop.f32.mrf.mxu3 }
  0xa9   : > { %v216_v43 = vpop.f32.mrf.mxu1  ;;  %v299_v44 = vpop.f32.mrf.mxu0 }
  0xaa   : > { %v245_v46 = vpop.f32.mrf.mxu2  ;;  %v217_v52 = vadd.f32 %v216_v43, %v186_v39  ;;  %v300_v54 = vadd.f32 %v299_v44, %v270_v51 }
  0xac   : > { %v246_v55 = vadd.f32 %v245_v46, %v217_v52 }
  0xae   : > { %v276_v59 = vadd.f32 %v275_v42, %v246_v55 }
  0xb0   : > { %v389_v48 = vpop.f32.mrf.mxu3 }
  0xb1   : > { %v303_v49 = vpop.f32.mrf.mxu0  ;;  %v325_v50 = vpop.f32.mrf.mxu1 }
  0xb2   : > { %v355_v53 = vpop.f32.mrf.mxu2  ;;  %v326_v56 = vadd.f32 %v325_v50, %v300_v54  ;;  %v304_v63 = vadd.f32 %v303_v49, %v276_v59 }
  0xb4   : > { %v356_v60 = vadd.f32 %v355_v53, %v326_v56 }
  0xb6   : > { %v390_v0 = vadd.f32 %v389_v48, %v356_v60 }
  0xb8   : > { %v393_v57 = vpop.f32.mrf.mxu3 }
  0xb9   : > { %v329_v58 = vpop.f32.mrf.mxu1  ;;  %v417_v62 = vpop.f32.mrf.mxu0 }
  0xba   : > { %v363_v61 = vpop.f32.mrf.mxu2  ;;  %v330_v1 = vadd.f32 %v329_v58, %v304_v63  ;;  %v418_v2 = vadd.f32 %v417_v62, %v390_v0 }
  0xbc   : > { %v364_v5 = vadd.f32 %v363_v61, %v330_v1 }
  0xbe   : > { %v394_v10 = vadd.f32 %v393_v57, %v364_v5 }
  0xc0   : > { %v502_v4 = vpop.f32.mrf.mxu3 }
  0xc1   : > { %v446_v3 = vpop.f32.mrf.mxu1  ;;  %v422_v9 = vpop.f32.mrf.mxu0 }
  0xc2   : > { %v447_v6 = vadd.f32 %v446_v3, %v418_v2  ;;  %v476_v7 = vpop.f32.mrf.mxu2  ;;  %v423_v12 = vadd.f32 %v422_v9, %v394_v10 }
  0xc4   : > { %v477_v8 = vadd.f32 %v476_v7, %v447_v6 }
  0xc6   : > { %v503_v11 = vadd.f32 %v502_v4, %v477_v8 }
  0xc8   : > { %510 = vst.msk [vmem:[%s143_s26] sm:$0xff] %vm509_vm0, %v503_v11  ;;  %v506_v16 = vpop.f32.mrf.mxu3 }
  0xc9   : > { %v452_v13 = vpop.f32.mrf.mxu1 }
  0xca   : > { %v453_v14 = vadd.f32 %v452_v13, %v423_v12  ;;  %v480_v15 = vpop.f32.mrf.mxu2 }
  0xcc   : > { %v481_v17 = vadd.f32 %v480_v15, %v453_v14 }
  0xce   : > { %v507_v18 = vadd.f32 %v506_v16, %v481_v17 }
  0xd0   : > { %511 = vst.msk [vmem:[%s143_s26 + $0x8] sm:$0xff] %vm509_vm0, %v507_v18 }
  0xd1 PF: > { %s12_s9 = sadd.s32 1, %s594_s9  }
  0xd2   : > { %p9_p4 = scmp.ge.s32.totalorder %s12_s9, 4  }
  0xd4   :  { %11 = sbr.rel (!%p9_p4) target bundleno = 1 (0x1), region = 58 }

</bundles_post_ra>
